<compile_context>
chip_gen: v7x
topology: tpu7x:2x2x1
jax: 0.10.0
libtpu: 0.0.40
codegen_flags: <defaults>
</compile_context>

<pallas_src>
from collections import namedtuple

import jax
import jax.numpy as jnp
from jax.experimental import pallas as pl
from jax.experimental.pallas import tpu as pltpu


class ShapeSpec(namedtuple("_ShapeSpec", ["channels", "height", "width", "stride"])):
    def __new__(cls, channels=None, height=None, width=None, stride=None):
        return super().__new__(cls, channels, height, width, stride)


def _round_up(x, m):
    return ((x + m - 1) // m) * m


# ---------------------------------------------------------------------------
# Pallas kernel: one fused GEMM (bf16 x bf16 -> f32) + bias + ReLU -> bf16
# ---------------------------------------------------------------------------
def _conv3x3_relu_kernel(x_ref, w_ref, b_ref, o_ref):
    """One (batch, row-tile) step.

    x_ref : (1, m_tile, K)      bf16 -- pixel-group-packed im2col rows.
    w_ref : (K, n_pad)          bf16 -- pixel-group-packed conv weights.
    b_ref : (1, n_pad)          f32  -- bias, tiled across the pixel group.
    o_ref : (1, m_tile, n_pad)  bf16 -- lane-dense output tile.
    """
    acc = jnp.dot(x_ref[0], w_ref[...], preferred_element_type=jnp.float32)
    o_ref[0, :, :] = jnp.maximum(acc + b_ref[...], 0.0).astype(o_ref.dtype)


def conv3x3_relu_pallas(x_nchw, weight, bias, *, target_rows=4096):
    """3x3 conv (stride 1, pad 1) + bias + ReLU; hot path in a Pallas TPU kernel.

    x_nchw : (B, Cin, H, W)    float32
    weight : (Cout, Cin, 3, 3) float32   (PyTorch conv weight layout)
    bias   : (Cout,)           float32
    returns: (B, Cout, H, W)   float32
    """
    B, Cin, H, W = x_nchw.shape
    Cout = weight.shape[0]
    LANES = 128

    # Pixel-group packing factor: P adjacent output columns share one GEMM row
    # so the output's lane axis is P*Cout (= 128 for Cout=32) with no zero pad.
    P = LANES // Cout if (Cout <= LANES and LANES % Cout == 0) else 1
    n_out = P * Cout
    n_pad = _round_up(n_out, LANES)

    Wp = _round_up(W, P)            # width padded to whole pixel groups
    G = Wp // P                     # pixel groups per image row
    K = 3 * (P + 2) * Cin           # contraction length (3 dy * (P+2) cols * Cin)
    M = H * G                       # GEMM rows per image

    # ---- tile heuristic: few large tiles, bounded by a VMEM budget ----
    def _tile_bytes(mt):
        return (3 * (mt * _round_up(K, LANES) * 2 + mt * n_pad * 2)
                + mt * n_pad * 4)               # bufs + f32 acc temp

    m_tile = _round_up(min(M, target_rows), 16)
    while m_tile > 16 and _tile_bytes(m_tile) > (24 << 20):
        m_tile = _round_up(m_tile // 2, 16)
    n_tiles = pl.cdiv(M, m_tile)
    m_tile = _round_up(pl.cdiv(M, n_tiles), 16)  # rebalance to minimize pad rows
    M_pad = m_tile * n_tiles

    # ---------- host-side packing (trace-time glue, runs in XLA) ----------
    # Padded NHWC image: 1-col/row conv pad + right pad to whole pixel groups.
    x = jnp.transpose(x_nchw, (0, 2, 3, 1))                        # NHWC
    x = jnp.pad(x, ((0, 0), (1, 1), (1, Wp - W + 1), (0, 0)))      # (B,H+2,Wp+2,Cin)

    # Pixel-group im2col: row (r, g) holds the 3*(P+2)*Cin taps that cover the
    # P output pixels of group g in image row r.
    taps = []
    for dy in range(3):
        for k in range(P + 2):
            taps.append(x[:, dy:dy + H, k::P, :][:, :, :G, :])     # (B,H,G,Cin)
    lhs = jnp.stack(taps, axis=3).reshape(B, M, K)
    lhs = jnp.pad(lhs, ((0, 0), (0, M_pad - M), (0, 0))).astype(jnp.bfloat16)

    # Pixel-group weight slab: column j*Cout+o of output pixel j uses tap
    # (dy, k=j+dx) -> weight[o, ci, dy, dx]; zero elsewhere.
    wt = jnp.transpose(weight, (2, 3, 1, 0))                       # (3,3,Cin,Cout)
    wb = jnp.zeros((3, P + 2, Cin, P, Cout), dtype=jnp.float32)
    for j in range(P):
        for dx in range(3):
            wb = wb.at[:, j + dx, :, j, :].set(wt[:, dx, :, :])
    wb = wb.reshape(K, n_out)
    wb = jnp.pad(wb, ((0, 0), (0, n_pad - n_out))).astype(jnp.bfloat16)

    bb = jnp.pad(jnp.tile(bias, P), (0, n_pad - n_out))
    bb = bb.reshape(1, n_pad).astype(jnp.float32)

    # ---- explicit VMEM budget (review: set vmem_limit_bytes from blocks) ----
    w_bytes = _round_up(K, 16) * n_pad * 2
    vmem_need = _tile_bytes(m_tile) + 2 * w_bytes + (2 << 20)
    vmem_limit = int(min(48 << 20, max(32 << 20, vmem_need)))

    cost = pl.CostEstimate(
        flops=2 * B * M_pad * K * n_pad,
        transcendentals=0,
        bytes_accessed=(B * M_pad * K * 2          # bf16 packed activations
                        + K * n_pad * 2            # bf16 weights
                        + n_pad * 4                # f32 bias
                        + B * M_pad * n_pad * 2),  # bf16 output
    )

    out = pl.pallas_call(
        _conv3x3_relu_kernel,
        out_shape=jax.ShapeDtypeStruct((B, M_pad, n_pad), jnp.bfloat16),
        grid_spec=pltpu.PrefetchScalarGridSpec(
            num_scalar_prefetch=0,
            grid=(B, n_tiles),
            in_specs=[
                pl.BlockSpec((1, m_tile, K), lambda b, r: (b, r, 0)),
                pl.BlockSpec((K, n_pad), lambda b, r: (0, 0)),
                pl.BlockSpec((1, n_pad), lambda b, r: (0, 0)),
            ],
            out_specs=pl.BlockSpec((1, m_tile, n_pad), lambda b, r: (b, r, 0)),
        ),
        compiler_params=pltpu.CompilerParams(
            dimension_semantics=("parallel", "parallel"),
            vmem_limit_bytes=vmem_limit,
        ),
        cost_estimate=cost,
    )(lhs, wb, bb)

    # Unpack: (B, M_pad, n_pad) -> (B, H, G, P, Cout) -> NCHW f32.
    out = out[:, :M, :n_out].reshape(B, H, G, P, Cout).reshape(B, H, Wp, Cout)
    out = out[:, :, :W, :].astype(jnp.float32)
    return jnp.transpose(out, (0, 3, 1, 2))


# ---------------------------------------------------------------------------
# Backbone (JAX side): reproduces the abstract base class's contract with a
# minimal concrete stem feeding the Pallas kernel.
# ---------------------------------------------------------------------------
class PallasBackbone:
    """JAX/Pallas counterpart of detectron_base.Backbone.

    Backbone.forward is abstract in the reference; this class supplies a
    minimal concrete stem (conv3x3 + bias + ReLU -> "res2") whose hot path is
    a Pallas TPU kernel, while keeping size_divisibility / output_shape
    exactly as in the base class.
    """

    def __init__(self, in_channels=4, out_channels=32, seed=0):
        k = jax.random.PRNGKey(seed)
        kw, kb = jax.random.split(k)
        self.weight = (jax.random.normal(kw, (out_channels, in_channels, 3, 3),
                                         dtype=jnp.float32) * 0.05)
        self.bias = (jax.random.normal(kb, (out_channels,),
                                       dtype=jnp.float32) * 0.05)
        self._out_features = ["res2"]
        self._out_feature_channels = {"res2": out_channels}
        self._out_feature_strides = {"res2": 1}

    def forward(self, x_nchw):
        feat = conv3x3_relu_pallas(x_nchw, self.weight, self.bias)
        return {"res2": feat}

    __call__ = forward

    @property
    def size_divisibility(self) -> int:
        return 0

    def output_shape(self):
        return {
            name: ShapeSpec(
                channels=self._out_feature_channels[name],
                stride=self._out_feature_strides[name],
            )
            for name in self._out_features
        }


if __name__ == "__main__":
    key = jax.random.PRNGKey(0)
    x = jax.random.normal(key, (2, 4, 16, 16), dtype=jnp.float32)  # NCHW

    backbone = PallasBackbone(in_channels=4, out_channels=32, seed=0)
    feats = backbone(x)
    res2 = jax.block_until_ready(feats["res2"])

    # contract checks (shape / stride / ReLU / divisibility)
    spec = backbone.output_shape()["res2"]
    assert res2.shape == (2, spec.channels, 16 // spec.stride, 16 // spec.stride)
    assert backbone.size_divisibility == 0
    assert bool(jnp.all(res2 >= 0.0))

    # numerical check vs XLA conv on the same bf16-rounded operands
    x_bf = x.astype(jnp.bfloat16).astype(jnp.float32)
    w_bf = backbone.weight.astype(jnp.bfloat16).astype(jnp.float32)
    ref = jax.lax.conv_general_dilated(
        x_bf, w_bf, window_strides=(1, 1),
        padding=((1, 1), (1, 1)),
        dimension_numbers=("NCHW", "OIHW", "NCHW"))
    ref = jnp.maximum(ref + backbone.bias[None, :, None, None], 0.0)
    assert bool(jnp.allclose(res2, ref, rtol=3e-2, atol=3e-2)), \
        float(jnp.max(jnp.abs(res2 - ref)))

    # TODO(synk): the reference Backbone.forward is abstract; only the concrete
    # stem's compute is expressed as a Pallas kernel here.
    print("KERNEL_OK")
</pallas_src>

<mosaic_0001>
module attributes {stable_mosaic.version = 11 : i64} {
  func.func @_conv3x3_relu_kernel(%arg0: i32, %arg1: i32, %arg2: memref<1x64x72xbf16, #tpu.memory_space<vmem>>, %arg3: memref<72x128xbf16, #tpu.memory_space<vmem>>, %arg4: memref<1x128xf32, #tpu.memory_space<vmem>>, %arg5: memref<1x64x128xbf16, #tpu.memory_space<vmem>>) attributes {dimension_semantics = [#tpu.dimension_semantics<parallel>, #tpu.dimension_semantics<parallel>], iteration_bounds = array<i64: 2, 1>, scalar_prefetch = 0 : i64, scratch_operands = 0 : i64, tpu.core_type = #tpu.core_type<tc>, window_params = [{transform_indices = @transform_0, window_bounds = array<i64: 1, 64, 72>}, {pipeline_mode = #tpu.pipeline_mode<synchronous>, transform_indices = @transform_1, window_bounds = array<i64: 72, 128>}, {pipeline_mode = #tpu.pipeline_mode<synchronous>, transform_indices = @transform_2, window_bounds = array<i64: 1, 128>}, {transform_indices = @transform_3, window_bounds = array<i64: 1, 64, 128>}]} {
    %c0 = arith.constant 0 : index
    %c0_0 = arith.constant 0 : index
    %c0_1 = arith.constant 0 : index
    %0 = vector.load %arg2[%c0, %c0_0, %c0_1] : memref<1x64x72xbf16, #tpu.memory_space<vmem>>, vector<1x64x72xbf16>
    %1 = vector.shape_cast %0 : vector<1x64x72xbf16> to vector<64x72xbf16>
    %c0_2 = arith.constant 0 : index
    %c0_3 = arith.constant 0 : index
    %2 = vector.load %arg3[%c0_2, %c0_3] : memref<72x128xbf16, #tpu.memory_space<vmem>>, vector<72x128xbf16>
    %cst = arith.constant dense<0.000000e+00> : vector<64x128xf32>
    %3 = tpu.matmul %1, %2, %cst {dimension_numbers = #tpu.dot_dimension_numbers<[1], [0], [0], [1], [0, 0, 1, 1], [], []>} : vector<64x72xbf16>, vector<72x128xbf16>, vector<64x128xf32> -> vector<64x128xf32>
    %c0_4 = arith.constant 0 : index
    %c0_5 = arith.constant 0 : index
    %4 = vector.load %arg4[%c0_4, %c0_5] : memref<1x128xf32, #tpu.memory_space<vmem>>, vector<1x128xf32>
    %5 = vector.broadcast %4 : vector<1x128xf32> to vector<64x128xf32>
    %6 = arith.addf %3, %5 : vector<64x128xf32>
    %cst_6 = arith.constant 0.000000e+00 : f32
    %7 = vector.broadcast %cst_6 : f32 to vector<64x128xf32>
    %8 = arith.maximumf %6, %7 : vector<64x128xf32>
    %9 = arith.truncf %8 : vector<64x128xf32> to vector<64x128xbf16>
    %c0_7 = arith.constant 0 : index
    %c0_8 = arith.constant 0 : index
    %c0_9 = arith.constant 0 : index
    %10 = vector.load %arg5[%c0_7, %c0_8, %c0_9] : memref<1x64x128xbf16, #tpu.memory_space<vmem>>, vector<1x64x128xbf16>
    %11 = vector.shape_cast %10 : vector<1x64x128xbf16> to vector<64x128xbf16>
    %12 = vector.shape_cast %9 : vector<64x128xbf16> to vector<1x64x128xbf16>
    tpu.vector_store %arg5[%c0_7, %c0_8, %c0_9], %12 {strides = array<i32>} : memref<1x64x128xbf16, #tpu.memory_space<vmem>>, vector<1x64x128xbf16>,
    return
  }
  func.func @transform_0(%arg0: i32, %arg1: i32) -> (i32, i32, i32) {
    %c0_i32 = arith.constant 0 : i32
    %c0_i32_0 = arith.constant 0 : i32
    return %arg0, %arg1, %c0_i32 : i32, i32, i32
  }
  func.func @transform_1(%arg0: i32, %arg1: i32) -> (i32, i32) {
    %c0_i32 = arith.constant 0 : i32
    %c0_i32_0 = arith.constant 0 : i32
    %c0_i32_1 = arith.constant 0 : i32
    return %c0_i32, %c0_i32_0 : i32, i32
  }
  func.func @transform_2(%arg0: i32, %arg1: i32) -> (i32, i32) {
    %c0_i32 = arith.constant 0 : i32
    %c0_i32_0 = arith.constant 0 : i32
    %c0_i32_1 = arith.constant 0 : i32
    return %c0_i32, %c0_i32_0 : i32, i32
  }
  func.func @transform_3(%arg0: i32, %arg1: i32) -> (i32, i32, i32) {
    %c0_i32 = arith.constant 0 : i32
    %c0_i32_0 = arith.constant 0 : i32
    return %arg0, %arg1, %c0_i32 : i32, i32, i32
  }
}

</mosaic_0001>

<bundles_post_ra>
// kernel: tpu_custom_call.1
= control target key start
LH: loop header
LB: loop body
LE: loop exit
PB: predicated region body
PF: predicated region fallthrough
CT: control target
= control target key end

     0   :  { %8 = vsyncpa [#allocation3], 0  ;;  %s1151_s0 = inlined_call_operand.hbm [shape: bf16[2,64,72], index: 0, kind: input, shape index: {}]   ;;  %s1152_s1 = inlined_call_operand.hbm [shape: bf16[72,128], index: 1, kind: input, shape index: {}]   ;;  %s1153_s2 = inlined_call_operand.vmem [shape: f32[1,128], index: 2, kind: input, shape index: {}]   ;;  %s1154_s3 = inlined_call_operand.hbm [shape: bf16[2,64,128], index: 3, kind: output, shape index: {}]  }
   0x1   :  { %10 = vsyncpa [#allocation3 + $0x1], 0 }
   0x2   :  { %11 = vsyncpa [#allocation6], 0 }
   0x3   :  { %12 = vsyncpa [#allocation4], 0 }
   0x4   :  { %14 = vsyncpa [#allocation4 + $0x1], 0  ;;  %s909_s12 = smov 0   ;;  %s911_s13 = smov 0  }
   0x5   :  { %s913_s14 = smov 0   ;;  %s915_s15 = smov 0  }
   0x6   :  { %s917_s16 = smov 0   ;;  %s919_s17 = smov 0  }
   0x7 LB: > { %s539_s18 = sadd.s32 4294967295, %s880_s17   ;;  %s540_s19 = sadd.s32 4294967294, %s880_s17   ;;  %s880_s17 = sphi %s919_s17, %s20_s17   ;;  %s876_s16 = sphi %s917_s16, %s1178_s16   ;;  %s872_s15 = sphi %s915_s15, %s1177_s15   ;;  %s868_s14 = sphi %s913_s14, %s1176_s14   ;;  %s864_s13 = sphi %s911_s13, %s1175_s13   ;;  %s860_s12 = sphi %s909_s12, %s1174_s12  }
   0x8   : > { %p54_p0 = scmp.ne.s32.totalorder %s864_s13, %s860_s12  ;;  %p943_p1 = scmp.eq.s32.totalorder %s539_s18, 0 }
   0x9   : > { %p947_p2 = scmp.eq.s32.totalorder %s539_s18, 1  ;;  %p128_p3 = scmp.eq.s32.totalorder %s540_s19, 1 }
   0xa   : > { %s1159_s20 = scalar_select %p943_p1, 1, 0 }
   0xb   : > { %s1160_s21 = scalar_select %p947_p2, 1, 0 }
   0xc   : > { %p953_p4 = por %p943_p1, %p54_p0  ;;  %p541_p5 = scmp.ge.s32.totalorder %s880_s17, 1 }
   0xd   : > { %p958_p6 = por %p128_p3, %p54_p0  ;;  %p135_p7 = scmp.lt.s32.totalorder %s880_s17, 3 }
   0xe   : > { %s1161_s22 = scalar_select %p953_p4, 1, 0 }
   0xf   : > { %s1162_s23 = scalar_select %p958_p6, 1, 0 }
  0x10   : > { %p963_p8 = pnand %p541_p5, %p135_p7  ;;  %s882_s25 = smov [#allocation5]  }
  0x11   : > { %s147_s26 = sshll.u32 %s882_s25, 4  ;;  %s32_s28 = sadd.s32 1, %s876_s16  ;;  %s148_s26 = int_to_ptr.vmem [resolvable:$true] %s147_s26 }
  0x12   : > { %s1163_s24 = scalar_select %p963_p8, 1, 0 }
  0x13   : > { %p658_p9 = pneg %p963_p8  ;;  %s736_s4 = scalar_lea.hbm %s1152_s1, 576 }
  0x14   : > { %p737_p12 = scmp.ne.s32.totalorder %s1152_s1, %s736_s4  ;;  %p743_p5 = scmp.lt.u32.totalorder %s736_s4, %s1152_s1 }
  0x15   : > { %p972_p11 = pnand %p658_p9, %p943_p1 }
  0x17   : > { %p738_p13 = pneg %p972_p11 }
  0x19   : > { %p739_p0 = pnand %p738_p13, %p737_p12 }
  0x1b   : > { %p740_p3 = pneg %p739_p0 }
  0x1d   : > { %p745_p7 = pnand %p743_p5, %p740_p3 }
  0x1f   : > { %748 = shalt.err (!%p745_p7)
}
  0x20   : > { %s749_s9 = scalar_lea.vmem %s148_s26, 576  ;;  %p757_p1 = scmp.lt.s32.totalorder %s148_s26, %s148_s26 }
  0x21   : > { %p750_p9 = scmp.ne.s32.totalorder %s148_s26, %s749_s9  ;;  %p758_p4 = scmp.lt.s32.totalorder %s749_s9, %s749_s9 }
  0x23   : > { %p752_p10 = pnand %p750_p9, %p738_p13  ;;  %p759_p8 = por %p758_p4, %p757_p1 }
  0x25   : > { %p753_p6 = pneg %p752_p10 }
  0x27   : > { %p760_p2 = pnand %p759_p8, %p753_p6 }
  0x29   : > { %763 = shalt.err (!%p760_p2)
}
  0x2a   : > { %s883_s10 = smov 64   ;;  %s884_s11 = smov 4  }
  0x2b   : > { %661 = dma.hbm_to_vmem [thread:$0]  (!%p972_p11), %s1152_s1, 576, %s148_s26, [#allocation6], %s883_s10, %s883_s10, %s884_s11  }
  0x2c   : > { %p34_p1 = scmp.ge.s32.totalorder %s32_s28, 2  ;;  %s41_s25 = sadd.s32 1, %s868_s14 }
  0x2d   : > { %p48_p2 = scmp.ne.s32.totalorder %s868_s14, %s864_s13  ;;  %p49_p4 = scmp.eq.s32.totalorder %s880_s17, 0 }
  0x2e   : > { %s1180_s28 = smov (%p34_p1, %s32_s28), 0  ;;  %p1166_p8 = scmp.ne.s32.totalorder %s1160_s21, 0 }
  0x2f   : > { %p1002_p6 = por %p49_p4, %p48_p2  ;;  %s36_s30 = ssub.s32 %s876_s16, %s1180_s28 }
  0x30   : > { %p1008_p10 = por %p1166_p8, %p48_p2  ;;  %p671_p12 = scmp.lt.s32.totalorder %s880_s17, 2 }
  0x31   : > { %p39_p11 = scmp.eq.s32.totalorder %s36_s30, 0  ;;  %s164_s26 = sand.u32 1, %s868_s14  }
  0x32   : > { %s544_s4 = sshll.u32 %s164_s26, 5  ;;  %s578_s6 = sshll.u32 %s876_s16, 9 }
  0x33   : > { %s1017_s5 = scalar_select %p39_p11, %s868_s14, %s41_s25  }
  0x34   : > { %s1023_s9 = scalar_lea.hbm %s1151_s0, %s578_s6  ;;  %s168_s21 = scalar_lea.vmem [#allocation2], %s544_s4 }
  0x35   : > { %s177_s18 = sshll.u32 %s168_s21, 4  ;;  %p1029_p13 = pnand %p671_p12, %p1002_p6  ;;  %s1025_s18 = int_to_ptr.vmem [resolvable:$true] %s177_s18 }
  0x36   : > { %s1033_s25 = scalar_lea.sflag [#allocation3], %s164_s26  ;;  %s764_s30 = scalar_lea.hbm %s1023_s9, 512 }
  0x37   : > { %p765_p0 = scmp.ne.s32.totalorder %s1023_s9, %s764_s30  ;;  %p766_p3 = pneg %p1029_p13 }
  0x38   : > { %s769_s29 = scalar_lea.hbm %s1151_s0, 1024  ;;  %p770_p9 = scmp.lt.u32.totalorder %s1023_s9, %s1151_s0 }
  0x39   : > { %p767_p5 = pnand %p766_p3, %p765_p0  ;;  %p771_p1 = scmp.lt.u32.totalorder %s769_s29, %s764_s30 }
  0x3a   : > { %p773_p4 = scmp.lt.u32.totalorder %s764_s30, %s1023_s9 }
  0x3b   : > { %p768_p7 = pneg %p767_p5  ;;  %p772_p2 = por %p771_p1, %p770_p9 }
  0x3d   : > { %p774_p6 = por %p773_p4, %p772_p2 }
  0x3f   : > { %p775_p8 = pnand %p774_p6, %p768_p7 }
  0x41   : > { %778 = shalt.err (!%p775_p8)
}
  0x42   : > { %s779_s26 = scalar_lea.vmem %s1025_s18, 512  ;;  %s885_s21 = smov [#allocation2]  }
  0x43   : > { %p780_p12 = scmp.ne.s32.totalorder %s1025_s18, %s779_s26  ;;  %s784_s4 = sshll.u32 %s885_s21, 4  ;;  %s785_s4 = int_to_ptr.vmem [resolvable:$false] %s784_s4 }
  0x44   : > { %s786_s6 = scalar_lea.vmem %s785_s4, 1024  ;;  %p787_p5 = scmp.lt.s32.totalorder %s1025_s18, %s785_s4 }
  0x45   : > { %p782_p11 = pnand %p780_p12, %p766_p3  ;;  %p788_p9 = scmp.lt.s32.totalorder %s786_s6, %s779_s26 }
  0x47   : > { %p783_p0 = pneg %p782_p11  ;;  %p789_p1 = por %p788_p9, %p787_p5 }
  0x49   : > { %p790_p2 = pnand %p789_p1, %p783_p0 }
  0x4b   : > { %793 = shalt.err (!%p790_p2)
}
  0x4c   : > { %665 = dma.hbm_to_vmem [thread:$0]  (!%p1029_p13), %s1023_s9, 512, %s1025_s18, %s1033_s25, %s883_s10, %s883_s10, %s884_s11  }
  0x4d   : > { %p1169_p3 = scmp.ne.s32.totalorder %s1163_s24, 0 }
  0x4e   : > { %s1067_s30 = sand.u32 (!%p1169_p3), 1, %s864_s13   ;;  %p1170_p7 = scmp.ne.s32.totalorder (!%p1169_p3), %s1161_s22, 0 }
  0x4f   : > { %189 = sbr.rel (%p1169_p3) target bundleno = 347 (0x15b), region = 32  ;;  %s548_s29 = sshll.u32 (!%p1169_p3), %s1067_s30, 5 }
  0x50   : > { %s192_s7 = scalar_lea.sflag (!%p1169_p3), [#allocation3], %s1067_s30  ;;  %s1073_s19 = scalar_lea.vmem (!%p1169_p3), [#allocation2], %s548_s29 }
  0x56   : > { %847 = dma.done.wait (%p1170_p7), %s192_s7, 512  }
  0x57   : > { %849 = vsyncadd (%p1170_p7), %s192_s7, 4294966784  ;;  %p1171_p13 = scmp.ne.s32.totalorder %s1159_s20, 0 }
  0x59   : > { %851 = dma.done.wait (%p1171_p13), [#allocation6], 576  }
  0x5a   : > { %853 = vsyncadd (%p1171_p13), [#allocation6], 4294966720  ;;  %v727_v0 = vld [vmem:[#allocation5] sm:$0xff]   ;;  %v728_v1 = vld [vmem:[#allocation5 + $0x8] sm:$0xff]   ;;  %vm296_vm0 = vcmask 588800   ;;  %vm309_vm1 = vcmask 1043456  }
  0x5b   : > { %620 = vmatprep.subr.bf16.mxu0 %v727_v0  ;;  %638 = vmatprep.subr.bf16.mxu1 %v727_v0  ;;  %v729_v2 = vld [vmem:[#allocation5 + $0x10] sm:$0xff]   ;;  %v732_v3 = vld [vmem:[%s1073_s19] sm:$0xff]   ;;  %v730_v5 = vld [vmem:[#allocation5 + $0x18] sm:$0xff]   ;;  %s221_s24 = scalar_lea.vmem [#allocation7], %s548_s29  ;;  %s587_s11 = sshll.u32 %s872_s15, 9 }
  0x5c   : > { %621 = vmatpush3.bf16.msra.mxu0 %v727_v0  ;;  %643 = vmatpush3.bf16.msra.mxu1 %v727_v0  ;;  %v733_v4 = vld [vmem:[%s1073_s19 + $0x10] sm:$0xff]   ;;  %v731_v6 = vld [vmem:[#allocation5 + $0x20] ss:$0 sps:$4 sm:$0xff]   ;;  %v734_v8 = vld [vmem:[%s1073_s19 + $0x8] sm:$0xff]   ;;  %s442_s10 = sshll.u32 %s221_s24, 4  ;;  %s1102_s15 = scalar_lea.hbm %s1154_s3, %s587_s11  ;;  %s1097_s10 = int_to_ptr.vmem [resolvable:$true] %s442_s10 }
  0x5d   : > { %622 = vmatprep.subr.bf16.mxu0 %v728_v1  ;;  %639 = vmatprep.subr.bf16.mxu1 %v728_v1  ;;  %v311_v7 = vsel %vm309_vm1, %v731_v6, 0  ;;  %v735_v9 = vld [vmem:[%s1073_s19 + $0x18] sm:$0xff]   ;;  %v551_v10 = vld [vmem:[%s1153_s2] ss:$0 sm:$0xff]  ;;  %s427_s25 = scalar_lea.sflag [#allocation4], %s1067_s30  ;;  %s794_s8 = scalar_lea.vmem %s1097_s10, 512 }
  0x5e   : > { %630 = vmatprep.mubr.msk.bf16.mxu0 %vm296_vm0, %v732_v3  ;;  %634 = vmatprep.mubr.msk.bf16.mxu1 %vm296_vm0, %v733_v4  ;;  %p795_p4 = scmp.ne.s32.totalorder %s1097_s10, %s794_s8  ;;  %s886_s26 = smov [#allocation7]  }
  0x5f   : > { %s798_s21 = sshll.u32 %s886_s26, 4  ;;  %s799_s21 = int_to_ptr.vmem [resolvable:$false] %s798_s21 }
  0x60   : > { %623 = vmatpush3.bf16.msra.mxu0 %v728_v1  ;;  %644 = vmatpush3.bf16.msra.mxu1 %v728_v1  ;;  %p796_p6 = pnand %p795_p4, %p1008_p10  ;;  %s800_s4 = scalar_lea.vmem %s799_s21, 1024 }
  0x61   : > { %624 = vmatprep.subr.bf16.mxu0 %v729_v2  ;;  %640 = vmatprep.subr.bf16.mxu1 %v729_v2  ;;  %p801_p12 = scmp.lt.s32.totalorder %s1097_s10, %s799_s21  ;;  %p802_p11 = scmp.lt.s32.totalorder %s800_s4, %s794_s8 }
  0x62   : > { %p797_p8 = pneg %p796_p6 }
  0x63   : > { %p803_p0 = por %p802_p11, %p801_p12 }
  0x64   : > { %625 = vmatpush3.bf16.msra.mxu0 %v729_v2  ;;  %645 = vmatpush3.bf16.msra.mxu1 %v729_v2 }
  0x65   : > { %626 = vmatprep.subr.bf16.mxu0 %v730_v5  ;;  %641 = vmatprep.subr.bf16.mxu1 %v730_v5  ;;  %p804_p5 = pnand %p803_p0, %p797_p8 }
  0x68   : > { %627 = vmatpush3.bf16.msra.mxu0 %v730_v5  ;;  %646 = vmatpush3.bf16.msra.mxu1 %v730_v5 }
  0x69   : > { %648 = vmatprep.subr.msk.bf16.mxu0 %vm309_vm1, %v731_v6  ;;  %649 = vmatprep.subr.msk.bf16.mxu1 %vm309_vm1, %v731_v6 }
  0x6c   : > { %629 = vmatpush3.bf16.msra.mxu0 %v311_v7  ;;  %647 = vmatpush3.bf16.msra.mxu1 %v311_v7 }
  0x6f   : > { %631 = vmatmul.mubr.msk.bf16.vlgmr.msra.gmra.mrb[0].mxu0 %vm296_vm0, %v734_v8  ;;  %635 = vmatmul.mubr.msk.bf16.vlgmr.msra.gmra.mrb[0].mxu1 %vm296_vm0, %v735_v9 }
 0x142   : > { %v632_v11 = vpop.f32.mrb[0].mxu0  ;;  %v636_v12 = vpop.f32.mrb[0].mxu1 }
 0x143   : > { %v356_v13 = vadd.f32 %v632_v11, %v551_v10  ;;  %v372_v14 = vadd.f32 %v636_v12, %v551_v10  ;;  %v347_v15 = vpop.f32.mrb[1].mxu0  ;;  %v363_v16 = vpop.f32.mrb[1].mxu1 }
 0x144   : > { %v348_v17 = vadd.f32 %v551_v10, %v347_v15  ;;  %v364_v18 = vadd.f32 %v551_v10, %v363_v16  ;;  %v633_v19 = vpop.f32.mrb[2].mxu0  ;;  %v637_v20 = vpop.f32.mrb[2].mxu1 }
 0x145   : > { %v359_v21 = vadd.f32 %v633_v19, %v551_v10  ;;  %v375_v22 = vadd.f32 %v637_v20, %v551_v10  ;;  %v350_v23 = vpop.f32.mrb[3].mxu0  ;;  %v366_v24 = vpop.f32.mrb[3].mxu1  ;;  %v380_v27 = vmax.f32 %v356_v13, 0.0  ;;  %v384_v28 = vmax.f32 %v372_v14, 0.0 }
 0x146   : > { %v351_v25 = vadd.f32 %v551_v10, %v350_v23  ;;  %v367_v26 = vadd.f32 %v551_v10, %v366_v24  ;;  %v378_v31 = vmax.f32 %v348_v17, 0.0  ;;  %v382_v32 = vmax.f32 %v364_v18, 0.0 }
 0x147   : > { %v381_v29 = vmax.f32 %v359_v21, 0.0  ;;  %v385_v30 = vmax.f32 %v375_v22, 0.0 }
 0x148   : > { %v379_v33 = vmax.f32 %v351_v25, 0.0  ;;  %v383_v34 = vmax.f32 %v367_v26, 0.0 }
 0x149   : > { %v596_v35 = vpack.c.bf16 %v381_v29, %v380_v27  ;;  %v606_v36 = vpack.c.bf16 %v385_v30, %v384_v28 }
 0x14a   : > { %v591_v37 = vpack.c.bf16 %v379_v33, %v378_v31  ;;  %v601_v38 = vpack.c.bf16 %v383_v34, %v382_v32 }
 0x14b   : > { %608 = vst [vmem:[%s221_s24 + $0x8] sm:$0xff] %v596_v35   ;;  %610 = vst [vmem:[%s221_s24 + $0x18] sm:$0xff] %v606_v36  }
 0x14c   : > { %592 = vst [vmem:[%s221_s24] sm:$0xff] %v591_v37   ;;  %609 = vst [vmem:[%s221_s24 + $0x10] sm:$0xff] %v601_v38  }
 0x14d   : > { %807 = shalt.err (!%p804_p5)
}
 0x14e   : > { %s808_s6 = scalar_lea.hbm %s1102_s15, 512  ;;  %s812_s19 = scalar_lea.hbm %s1154_s3, 1024 }
 0x14f   : > { %p809_p9 = scmp.ne.s32.totalorder %s1102_s15, %s808_s6  ;;  %p813_p3 = scmp.lt.u32.totalorder %s1102_s15, %s1154_s3 }
 0x150   : > { %p814_p7 = scmp.lt.u32.totalorder %s812_s19, %s808_s6  ;;  %p816_p4 = scmp.lt.u32.totalorder %s808_s6, %s1102_s15 }
 0x151   : > { %p810_p1 = pnand %p809_p9, %p1008_p10 }
 0x152   : > { %p815_p13 = por %p814_p7, %p813_p3 }
 0x153   : > { %p811_p2 = pneg %p810_p1 }
 0x154   : > { %p817_p6 = por %p816_p4, %p815_p13 }
 0x156   : > { %p818_p8 = pnand %p817_p6, %p811_p2 }
 0x158   : > { %821 = shalt.err (!%p818_p8)
}
 0x159   : > { %s887_s24 = smov 64   ;;  %s888_s11 = smov 4  }
 0x15a   : > { %656 = dma.vmem_to_hbm [thread:$0]  (%p1008_p10), %s1097_s10, 512, %s1102_s15, %s427_s25, %s887_s24, %s887_s24, %s888_s11  }
 0x15b PF: > { %s457_s9 = sand.u32 1, %s860_s12   ;;  %p1172_p12 = scmp.ne.s32.totalorder %s1162_s23, 0 }
 0x15c   : > { %p1173_p11 = scmp.ge.s32.totalorder %s880_s17, 2  ;;  %s458_s18 = scalar_lea.sflag [#allocation4], %s457_s9 }
 0x15e   : > { %p667_p0 = pnand %p1173_p11, %p1172_p12 }
 0x160   : > { %855 = dma.done.wait (!%p667_p0), %s458_s18, 512  }
 0x161   : > { %857 = vsyncadd (!%p667_p0), %s458_s18, 4294966784  ;;  %s20_s17 = sadd.s32 1, %s880_s17   ;;  %s1174_s12 = smov %s864_s13 }
 0x162   : > { %p17_p5 = scmp.ge.s32.totalorder %s20_s17, 4   ;;  %s1175_s13 = smov %s868_s14 }
 0x163   : > { %s1176_s14 = smov %s1017_s5  ;;  %s1177_s15 = smov %s876_s16 }
 0x164   : > { %s1178_s16 = smov %s1180_s28  ;;  %19 = sbr.rel (!%p17_p5) target bundleno = 7 (0x7), region = 81 }
 0x16b   :  { %463 = vsyncpa [#allocation3], 1 }
 0x16c   :  { %465 = vsyncpa [#allocation3 + $0x1], 1 }
 0x16d   :  { %466 = vsyncpa [#allocation6], 1 }
 0x16e   :  { %467 = vsyncpa [#allocation4], 1 }
 0x16f   :  { %469 = vsyncpa [#allocation4 + $0x1], 1 }

</bundles_post_ra>
